<compile_context>
chip_gen: v7x
topology: tpu7x:2x2x1
jax: 0.10.0
libtpu: 0.0.40
codegen_flags: <defaults>
</compile_context>

<pallas_src>
import jax
import jax.numpy as jnp
from jax.experimental import pallas as pl
from jax.experimental.pallas import tpu as pltpu

_LANES = 128
_SUBLANES = 8
_MAX_TILE_ROWS = 4096          # 4096*128*4B = 2 MiB per input per buffer
_MIN_TILE_ROWS = 256           # below this, prefer padding over tiny tiles
_PALLAS_MIN_WORDS = 1 << 16    # ~256 KiB: below this, launch overhead dominates


def _eq_check_kernel(x_ref, ex_ref, eq_ref):
    """Per-tile byte-identity check.

    x_ref / ex_ref : (tile_rows, 128) int32 -- raw 32-bit words of the inputs
    eq_ref         : (1, 8, 128)      int32 -- per-lane equality flags (1 == equal)

    Steady-state work is a pure-VPU integer compare + AND-reduce over the
    sublane axis; the flag store is a lane-dense, unmasked (8,128) block.  The
    wrapper does one tiny jnp.min over all tiles' flags.
    """
    eq_lanes = jnp.all(x_ref[...] == ex_ref[...], axis=0)          # (128,) bool
    eq_ref[...] = jnp.broadcast_to(
        eq_lanes.astype(jnp.int32)[None, None, :], (1, _SUBLANES, _LANES)
    )


def _as_i32_words(a):
    """Reinterpret an array's bytes as a flat int32 word vector (cheap bitcast)."""
    if a.dtype == jnp.bool_:
        a = a.astype(jnp.uint8)
    itemsize = a.dtype.itemsize
    if itemsize in (4, 8):
        # 8-byte dtypes bitcast to (..., 2) int32; reshape flattens either way.
        return jax.lax.bitcast_convert_type(a, jnp.int32).reshape(-1)
    # sub-32-bit: pack 2 (16-bit) or 4 (8-bit) elements per int32 word
    per_word = 4 // itemsize
    flat = a.reshape(-1)
    pad = (-flat.size) % per_word
    if pad:
        flat = jnp.pad(flat, (0, pad))
    return jax.lax.bitcast_convert_type(flat.reshape(-1, per_word), jnp.int32)


def _pick_tiling(rows):
    """Return (padded_rows, tile_rows) for a (rows, 128) int32 word slab."""
    if rows <= _MAX_TILE_ROWS:
        # Single grid step; a full-extent block is always layout-legal.
        return rows, rows
    # Prefer a multiple-of-8 divisor of rows so a large input needs no pad copy.
    t = (_MAX_TILE_ROWS // _SUBLANES) * _SUBLANES
    while t >= _MIN_TILE_ROWS:
        if rows % t == 0:
            return rows, t
        t -= _SUBLANES
    # No reasonable divisor: pad up to a multiple of the max tile.  Both
    # operands are padded identically, so the pad region always compares equal.
    padded = ((rows + _MAX_TILE_ROWS - 1) // _MAX_TILE_ROWS) * _MAX_TILE_ROWS
    return padded, _MAX_TILE_ROWS


def _pallas_eq_check(xw, ew, rows, tile_rows):
    num_tiles = rows // tile_rows
    x2d = xw.reshape(rows, _LANES)
    e2d = ew.reshape(rows, _LANES)
    flags = pl.pallas_call(
        _eq_check_kernel,
        out_shape=jax.ShapeDtypeStruct((num_tiles, _SUBLANES, _LANES), jnp.int32),
        grid=(num_tiles,),
        in_specs=[
            pl.BlockSpec((tile_rows, _LANES), lambda i: (i, 0)),
            pl.BlockSpec((tile_rows, _LANES), lambda i: (i, 0)),
        ],
        out_specs=pl.BlockSpec((1, _SUBLANES, _LANES), lambda i: (i, 0, 0)),
        compiler_params=pltpu.CompilerParams(
            # Per-tile flags are independent -> the grid axis can shard across
            # both TensorCores on v7x; harmless on single-TC v5e/v6e.
            dimension_semantics=("parallel",),
        ),
        cost_estimate=pl.CostEstimate(
            flops=rows * _LANES,
            transcendentals=0,
            bytes_accessed=2 * rows * _LANES * 4
            + num_tiles * _SUBLANES * _LANES * 4,
        ),
    )(x2d, e2d)
    return jnp.min(flags)


def argument_model_forward(x, example_input, *, force_pallas=False):
    """Identity forward with an equality check against example_input.

    Returns (y, eq_flag):
      y        -- the input `x`, returned unchanged (no copy, no kernel output)
      eq_flag  -- int32 scalar, 1 iff x is byte-identical to example_input.

    # TODO(synk): the PyTorch module raises inside forward; in the compiled JAX
    # path the caller must assert on `eq_flag` (done in __main__ below).
    """
    assert x.shape == example_input.shape and x.dtype == example_input.dtype

    xw = _as_i32_words(x)
    ew = _as_i32_words(example_input)

    # Pad the word stream (identically for both operands) to a whole number of
    # 128-lane rows; the pad compares equal by construction.
    lane_pad = (-xw.size) % _LANES
    if lane_pad:
        xw = jnp.pad(xw, (0, lane_pad))
        ew = jnp.pad(ew, (0, lane_pad))
    rows = xw.size // _LANES

    if xw.size < _PALLAS_MIN_WORDS and not force_pallas:
        # Tiny inputs: a separate custom-call launch costs more than the check
        # itself; let XLA fuse the compare with neighbouring ops.
        eq_flag = jnp.all(xw == ew).astype(jnp.int32)
    else:
        padded_rows, tile_rows = _pick_tiling(rows)
        if padded_rows != rows:
            extra = (padded_rows - rows) * _LANES
            xw = jnp.pad(xw, (0, extra))
            ew = jnp.pad(ew, (0, extra))
            rows = padded_rows
        eq_flag = _pallas_eq_check(xw, ew, rows, tile_rows)

    # Identity semantics: return the caller's tensor unchanged (zero copies).
    return x, eq_flag


if __name__ == "__main__":
    key = jax.random.PRNGKey(0)

    # --- shipped small shape: NCHW conv-style input, force the Pallas path ---
    x = jax.random.normal(key, (2, 4, 16, 16), dtype=jnp.float32)
    example_input = x  # module stores the example input at __init__

    y, eq = argument_model_forward(x, example_input, force_pallas=True)
    y = jax.block_until_ready(y)
    eq = jax.block_until_ready(eq)
    assert int(eq) == 1, "kernel equality check failed (f32 positive case)"
    assert jnp.array_equal(y, x), "identity pass-through mismatch"

    # Negative check: a perturbed input must flip the flag to 0.
    x_bad = x.at[0, 0, 0, 0].add(1.0)
    _, eq_bad = argument_model_forward(x_bad, example_input, force_pallas=True)
    assert int(jax.block_until_ready(eq_bad)) == 0, "kernel missed f32 mismatch"

    # --- bf16 path (exercises packed sub-32-bit compare) ---
    xb = jax.random.normal(jax.random.PRNGKey(1), (2, 4, 16, 16), dtype=jnp.bfloat16)
    _, eq_b = argument_model_forward(xb, xb, force_pallas=True)
    assert int(jax.block_until_ready(eq_b)) == 1, "bf16 positive case failed"
    xb_bad = xb.at[1, 3, 5, 7].add(jnp.bfloat16(1.0))
    _, eq_b_bad = argument_model_forward(xb_bad, xb, force_pallas=True)
    assert int(jax.block_until_ready(eq_b_bad)) == 0, "bf16 mismatch missed"

    # --- multi-tile path (8192 rows -> 2 x 4096-row tiles, parallel grid) ---
    xm = jax.random.normal(jax.random.PRNGKey(2), (32, 8, 64, 64), dtype=jnp.float32)
    _, eq_m = argument_model_forward(xm, xm)
    assert int(jax.block_until_ready(eq_m)) == 1, "multi-tile positive case failed"
    xm_bad = xm.at[31, 7, 63, 63].add(1.0)
    _, eq_m_bad = argument_model_forward(xm_bad, xm)
    assert int(jax.block_until_ready(eq_m_bad)) == 0, "multi-tile mismatch missed"

    print("KERNEL_OK")
</pallas_src>

<mosaic_0001>
module attributes {stable_mosaic.version = 11 : i64} {
  func.func @_eq_check_kernel(%arg0: i32, %arg1: memref<16x128xi32, #tpu.memory_space<vmem>>, %arg2: memref<16x128xi32, #tpu.memory_space<vmem>>, %arg3: memref<1x8x128xi32, #tpu.memory_space<vmem>>) attributes {dimension_semantics = [#tpu.dimension_semantics<parallel>], iteration_bounds = array<i64: 1>, scalar_prefetch = 0 : i64, scratch_operands = 0 : i64, tpu.core_type = #tpu.core_type<tc>, window_params = [{transform_indices = @transform_0, window_bounds = array<i64: 16, 128>}, {transform_indices = @transform_1, window_bounds = array<i64: 16, 128>}, {transform_indices = @transform_2, window_bounds = array<i64: 1, 8, 128>}]} {
    %c0 = arith.constant 0 : index
    %c0_0 = arith.constant 0 : index
    %0 = vector.load %arg1[%c0, %c0_0] : memref<16x128xi32, #tpu.memory_space<vmem>>, vector<16x128xi32>
    %c0_1 = arith.constant 0 : index
    %c0_2 = arith.constant 0 : index
    %1 = vector.load %arg2[%c0_1, %c0_2] : memref<16x128xi32, #tpu.memory_space<vmem>>, vector<16x128xi32>
    %2 = arith.cmpi eq, %0, %1 : vector<16x128xi32>
    %cst = arith.constant 1.000000e+00 : f32
    %cst_3 = arith.constant 0.000000e+00 : f32
    %3 = vector.broadcast %cst : f32 to vector<16x128xf32>
    %4 = vector.broadcast %cst_3 : f32 to vector<16x128xf32>
    %5 = arith.select %2, %3, %4 : vector<16x128xi1>, vector<16x128xf32>
    %cst_4 = arith.constant dense<0x7F800000> : vector<128xf32>
    %6 = vector.multi_reduction <minimumf>, %5, %cst_4 [0] : vector<16x128xf32> to vector<128xf32>
    %cst_5 = arith.constant 0.000000e+00 : f32
    %7 = vector.broadcast %cst_5 : f32 to vector<128xf32>
    %8 = arith.cmpf ogt, %6, %7 : vector<128xf32>
    %9 = arith.extui %8 : vector<128xi1> to vector<128xi32>
    %10 = vector.shape_cast %9 : vector<128xi32> to vector<1x1x128xi32>
    %11 = vector.shape_cast %10 : vector<1x1x128xi32> to vector<1x1x128xi32>
    %12 = vector.broadcast %11 : vector<1x1x128xi32> to vector<1x8x128xi32>
    %c0_6 = arith.constant 0 : index
    %c0_7 = arith.constant 0 : index
    %c0_8 = arith.constant 0 : index
    %13 = vector.load %arg3[%c0_6, %c0_7, %c0_8] : memref<1x8x128xi32, #tpu.memory_space<vmem>>, vector<1x8x128xi32>
    tpu.vector_store %arg3[%c0_6, %c0_7, %c0_8], %12 {strides = array<i32>} : memref<1x8x128xi32, #tpu.memory_space<vmem>>, vector<1x8x128xi32>,
    return
  }
  func.func @transform_0(%arg0: i32) -> (i32, i32) {
    %c0_i32 = arith.constant 0 : i32
    %c0_i32_0 = arith.constant 0 : i32
    return %arg0, %c0_i32 : i32, i32
  }
  func.func @transform_1(%arg0: i32) -> (i32, i32) {
    %c0_i32 = arith.constant 0 : i32
    %c0_i32_0 = arith.constant 0 : i32
    return %arg0, %c0_i32 : i32, i32
  }
  func.func @transform_2(%arg0: i32) -> (i32, i32, i32) {
    %c0_i32 = arith.constant 0 : i32
    %c0_i32_0 = arith.constant 0 : i32
    %c0_i32_1 = arith.constant 0 : i32
    return %arg0, %c0_i32, %c0_i32_0 : i32, i32, i32
  }
}

</mosaic_0001>

<bundles_post_ra>
// kernel: tpu_custom_call.1
= control target key start
LH: loop header
LB: loop body
LE: loop exit
PB: predicated region body
PF: predicated region fallthrough
CT: control target
= control target key end

     0   :  { %7 = vsyncpa [#allocation3], 0  ;;  %s211_s0 = inlined_call_operand.hbm [shape: s32[16,128], index: 0, kind: input, shape index: {}]   ;;  %s212_s1 = inlined_call_operand.hbm [shape: s32[16,128], index: 1, kind: input, shape index: {}]   ;;  %s213_s2 = inlined_call_operand.hbm [shape: s32[1,8,128], index: 2, kind: output, shape index: {}]  }
   0x1   :  { %8 = vsyncpa [#allocation6], 0 }
   0x2   :  { %9 = vsyncpa [#allocation4], 0  ;;  %s153_s9 = smov [#allocation2]   ;;  %s81_s13 = scalar_lea.hbm %s211_s0, 256 }
   0x3   :  { %s15_s10 = sshll.u32 %s153_s9, 4  ;;  %p82_p0 = scmp.ne.s32.totalorder %s211_s0, %s81_s13  ;;  %s16_s10 = int_to_ptr.vmem [resolvable:$true] %s15_s10 }
   0x4   :  { %p85_p1 = scmp.lt.u32.totalorder %s81_s13, %s211_s0 }
   0x6   :  { %p87_p2 = pnand %p85_p1, %p82_p0 }
   0x8   :  { %90 = shalt.err (!%p87_p2)
}
   0x9   :  { %s91_s18 = scalar_lea.vmem %s16_s10, 256  ;;  %p96_p4 = scmp.lt.s32.totalorder %s16_s10, %s16_s10 }
   0xa   :  { %p92_p3 = scmp.ne.s32.totalorder %s16_s10, %s91_s18  ;;  %p97_p5 = scmp.lt.s32.totalorder %s91_s18, %s91_s18 }
   0xc   :  { %p98_p6 = por %p97_p5, %p96_p4 }
   0xe   :  { %p99_p7 = pnand %p98_p6, %p92_p3 }
  0x10   :  { %102 = shalt.err (!%p99_p7)
}
  0x11   :  { %s154_s19 = smov 128   ;;  %s155_s20 = smov 8  }
  0x12   :  { %21 = dma.hbm_to_vmem [thread:$0]  %s211_s0, 256, %s16_s10, [#allocation3], %s154_s19, %s154_s19, %s155_s20  }
  0x13   :  { %s156_s23 = smov [#allocation5]   ;;  %s103_s27 = scalar_lea.hbm %s212_s1, 256 }
  0x14   :  { %s27_s24 = sshll.u32 %s156_s23, 4  ;;  %p104_p8 = scmp.ne.s32.totalorder %s212_s1, %s103_s27  ;;  %s28_s24 = int_to_ptr.vmem [resolvable:$true] %s27_s24 }
  0x15   :  { %p107_p9 = scmp.lt.u32.totalorder %s103_s27, %s212_s1 }
  0x17   :  { %p109_p10 = pnand %p107_p9, %p104_p8 }
  0x19   :  { %112 = shalt.err (!%p109_p10)
}
  0x1a   :  { %s113_s4 = scalar_lea.vmem %s28_s24, 256  ;;  %p118_p12 = scmp.lt.s32.totalorder %s28_s24, %s28_s24 }
  0x1b   :  { %p114_p11 = scmp.ne.s32.totalorder %s28_s24, %s113_s4  ;;  %p119_p13 = scmp.lt.s32.totalorder %s113_s4, %s113_s4 }
  0x1d   :  { %p120_p0 = por %p119_p13, %p118_p12 }
  0x1f   :  { %p121_p1 = pnand %p120_p0, %p114_p11 }
  0x21   :  { %124 = shalt.err (!%p121_p1)
}
  0x22   :  { %33 = dma.hbm_to_vmem [thread:$0]  %s212_s1, 256, %s28_s24, [#allocation6], %s154_s19, %s154_s19, %s155_s20  }
  0x23   :  { %147 = dma.done.wait [#allocation3], 256  }
  0x24   :  { %148 = vsyncadd [#allocation3], 4294967040 }
  0x25   :  { %149 = dma.done.wait [#allocation6], 256  }
  0x26   :  { %150 = vsyncadd [#allocation6], 4294967040  ;;  %v40_v0 = vld [vmem:[#allocation2] sm:$0xff]  ;;  %v41_v1 = vld [vmem:[#allocation2 + $0x8] sm:$0xff]  ;;  %v157_v4 = vmov 0.0   ;;  %s158_s1 = smov [#allocation7]  }
  0x27   :  { %v42_v2 = vld [vmem:[#allocation5] sm:$0xff]  ;;  %v43_v3 = vld [vmem:[#allocation5 + $0x8] sm:$0xff]  ;;  %s64_s6 = sshll.u32 %s158_s1, 4  ;;  %v159_v14 = vmov 0   ;;  %s65_s6 = int_to_ptr.vmem [resolvable:$true] %s64_s6 }
  0x28   :  { %vm44_vm0 = vcmp.eq.s32.totalorder %v40_v0, %v42_v2  ;;  %vm45_vm1 = vcmp.eq.s32.totalorder %v41_v1, %v43_v3  ;;  %s125_s7 = scalar_lea.vmem %s65_s6, 128  ;;  %p130_p3 = scmp.lt.s32.totalorder %s65_s6, %s65_s6 }
  0x29   :  { %v46_v5 = vsel %vm44_vm0, 1.0, %v157_v4  ;;  %v47_v6 = vsel %vm45_vm1, 1.0, %v157_v4  ;;  %p126_p2 = scmp.ne.s32.totalorder %s65_s6, %s125_s7  ;;  %p131_p4 = scmp.lt.s32.totalorder %s125_s7, %s125_s7 }
  0x2a   :  { %v48_v7 = vmin.f32 %v46_v5, %v47_v6 }
  0x2b   :  { %p132_p5 = por %p131_p4, %p130_p3 }
  0x2c   :  { %v49_v8 = vrot.slane %v48_v7, 4 }
  0x2d   :  { %p133_p6 = pnand %p132_p5, %p126_p2 }
  0x2e   :  { %v50_v9 = vmin.f32 %v48_v7, %v49_v8 }
  0x30   :  { %v51_v10 = vrot.slane %v50_v9, 2 }
  0x32   :  { %v52_v11 = vmin.f32 %v50_v9, %v51_v10 }
  0x34   :  { %v53_v12 = vrot.slane %v52_v11, 1 }
  0x36   :  { %v54_v13 = vmin.f32 %v52_v11, %v53_v12 }
  0x38   :  { %vm55_vm2 = vcmp.gt.f32.partialorder %v54_v13, 0.0 }
  0x39   :  { %v56_v15 = vsel %vm55_vm2, 1, %v159_v14 }
  0x3a   :  { %57 = vst [vmem:[#allocation7] sm:$0xff] %v56_v15 }
  0x3b   :  { %136 = shalt.err (!%p133_p6)
}
  0x3c   :  { %s137_s10 = scalar_lea.hbm %s213_s2, 128 }
  0x3d   :  { %p138_p7 = scmp.ne.s32.totalorder %s213_s2, %s137_s10  ;;  %p141_p8 = scmp.lt.u32.totalorder %s137_s10, %s213_s2 }
  0x3f   :  { %p143_p9 = pnand %p141_p8, %p138_p7 }
  0x41   :  { %146 = shalt.err (!%p143_p9)
}
  0x42   :  { %67 = dma.vmem_to_hbm [thread:$0]  %s65_s6, 128, %s213_s2, [#allocation4]  }
  0x43   :  { %151 = dma.done.wait [#allocation4], 128  }
  0x44   :  { %152 = vsyncadd [#allocation4], 4294967168 }
  0x45   :  { %71 = vsyncpa [#allocation3], 1 }
  0x46   :  { %72 = vsyncpa [#allocation6], 1 }
  0x47   :  { %73 = vsyncpa [#allocation4], 1 }

</bundles_post_ra>
